<compile_context>
chip_gen: v6e
topology: v6e:2x2x1
jax: 0.10.0
libtpu: 0.0.40
codegen_flags: <defaults>
</compile_context>

<pallas_src>
import jax
import jax.numpy as jnp
from jax.experimental import pallas as pl
from jax.experimental.pallas import tpu as pltpu

n_embed = 32
block_size = 8

N_PAD = 128  # lane-dense output width (pad out-dim of W / bias to 128 lanes)


def feedforward_kernel(x_ref, w_ref, b_ref, o_ref):
    # x_ref: (TM, C)      bf16 activation row tile
    # w_ref: (C, N_PAD)   bf16 weight stored as (in, out), out-dim zero-padded
    # b_ref: (1, N_PAD)   f32 bias (zero-padded), broadcasts over rows
    # o_ref: (TM, N_PAD)  f32 output tile (full 128-lane, unmasked store)
    y = jnp.dot(x_ref[...], w_ref[...],
                preferred_element_type=jnp.float32)      # bf16 MXU, f32 acc
    y = y + b_ref[...]                                   # f32 VPU epilogue
    o_ref[...] = jnp.maximum(y, 0.0).astype(o_ref.dtype)  # ReLU


def feedforward_forward(x, w, b):
    # x: (B, T, C) f32; w: (C, C) f32 stored as (in, out); b: (1, C) f32.
    B, T, C = x.shape
    M = B * T

    # bf16 MXU operands (f32 accumulation in-kernel); bias stays f32.
    x2d = x.reshape(M, C).astype(jnp.bfloat16)
    w_pad = jnp.zeros((C, N_PAD), jnp.bfloat16).at[:, :C].set(
        w.astype(jnp.bfloat16))
    b_pad = jnp.zeros((1, N_PAD), jnp.float32).at[:, :C].set(
        b.reshape(1, C).astype(jnp.float32))

    # Row tiling. Small M -> single fat step; large M -> 512-row tiles so the
    # grid has >=2 "parallel" steps (v7x megacore) while each tile is still big
    # enough to amortize the ~0.35us/step overhead on v5e/v6e.
    TM = M if M <= 512 else 512
    TM = max(8, ((TM + 7) // 8) * 8)          # keep sublane-aligned
    grid_m = pl.cdiv(M, TM)
    M_pad = grid_m * TM
    if M_pad != M:                             # tail-safe: pad, never drop rows
        x2d = jnp.pad(x2d, ((0, M_pad - M), (0, 0)))

    out2d = pl.pallas_call(
        feedforward_kernel,
        out_shape=jax.ShapeDtypeStruct((M_pad, N_PAD), jnp.float32),
        grid_spec=pltpu.PrefetchScalarGridSpec(
            num_scalar_prefetch=0,
            grid=(grid_m,),
            in_specs=[
                # activation row tile: double-buffered (default) across steps
                pl.BlockSpec((TM, C), lambda i: (i, 0)),
                # resident weight/bias: constant index_map -> single-buffer
                pl.BlockSpec((C, N_PAD), lambda i: (0, 0),
                             pipeline_mode=pl.Buffered(1)),
                pl.BlockSpec((1, N_PAD), lambda i: (0, 0),
                             pipeline_mode=pl.Buffered(1)),
            ],
            out_specs=pl.BlockSpec((TM, N_PAD), lambda i: (i, 0)),
        ),
        compiler_params=pltpu.CompilerParams(
            dimension_semantics=("parallel",),
            vmem_limit_bytes=32 * 1024 * 1024,
        ),
    )(x2d, w_pad, b_pad)

    # Drop row padding and the lane padding, restore (B, T, C).
    return out2d[:M, :C].reshape(B, T, C)


def init_params(key):
    # Match nn.Linear(n_embed, n_embed) default init: U(-1/sqrt(fan_in), +...).
    # PyTorch computes x @ W.T + b with W (out, in); we store the weight
    # already transposed as (in, out) so the kernel does x @ W + b.
    kw, kb = jax.random.split(key)
    bound = 1.0 / (n_embed ** 0.5)
    w = jax.random.uniform(kw, (n_embed, n_embed), jnp.float32,
                           minval=-bound, maxval=bound)   # (in, out)
    b = jax.random.uniform(kb, (1, n_embed), jnp.float32,
                           minval=-bound, maxval=bound)
    return w, b


def feedforward_reference(x, w, b):
    # Pure-JAX reference mirroring the kernel's numerics (bf16 matmul, f32 acc,
    # f32 bias + ReLU), so tolerances stay tight.
    y = jnp.dot(x.astype(jnp.bfloat16), w.astype(jnp.bfloat16),
                preferred_element_type=jnp.float32)
    return jax.nn.relu(y + b.reshape(1, 1, n_embed))


if __name__ == "__main__":
    key = jax.random.PRNGKey(0)
    kx, kp = jax.random.split(key)
    B, T, C = 2, block_size, n_embed      # (2, 8, 32)
    x = jax.random.normal(kx, (B, T, C), jnp.float32)
    w, b = init_params(kp)

    out = feedforward_forward(x, w, b)
    out = jax.block_until_ready(out)

    ref = feedforward_reference(x, w, b)
    assert out.shape == (B, T, C)
    assert jnp.allclose(out, ref, atol=1e-3, rtol=1e-3), "mismatch vs reference"

    print("KERNEL_OK")
</pallas_src>

<mosaic_0001>
module attributes {stable_mosaic.version = 11 : i64} {
  func.func @feedforward_kernel(%arg0: i32, %arg1: memref<16x32xbf16, #tpu.memory_space<vmem>>, %arg2: memref<32x128xbf16, #tpu.memory_space<vmem>>, %arg3: memref<1x128xf32, #tpu.memory_space<vmem>>, %arg4: memref<16x128xf32, #tpu.memory_space<vmem>>) attributes {dimension_semantics = [#tpu.dimension_semantics<parallel>], iteration_bounds = array<i64: 1>, scalar_prefetch = 0 : i64, scratch_operands = 0 : i64, tpu.core_type = #tpu.core_type<tc>, window_params = [{transform_indices = @transform_0, window_bounds = array<i64: 16, 32>}, {pipeline_mode = #tpu.pipeline_mode<synchronous>, transform_indices = @transform_1, window_bounds = array<i64: 32, 128>}, {pipeline_mode = #tpu.pipeline_mode<synchronous>, transform_indices = @transform_2, window_bounds = array<i64: 1, 128>}, {transform_indices = @transform_3, window_bounds = array<i64: 16, 128>}]} {
    %c0 = arith.constant 0 : index
    %c0_0 = arith.constant 0 : index
    %0 = vector.load %arg1[%c0, %c0_0] : memref<16x32xbf16, #tpu.memory_space<vmem>>, vector<16x32xbf16>
    %c0_1 = arith.constant 0 : index
    %c0_2 = arith.constant 0 : index
    %1 = vector.load %arg2[%c0_1, %c0_2] : memref<32x128xbf16, #tpu.memory_space<vmem>>, vector<32x128xbf16>
    %cst = arith.constant dense<0.000000e+00> : vector<16x128xf32>
    %2 = tpu.matmul %0, %1, %cst {dimension_numbers = #tpu.dot_dimension_numbers<[1], [0], [0], [1], [0, 0, 1, 1], [], []>} : vector<16x32xbf16>, vector<32x128xbf16>, vector<16x128xf32> -> vector<16x128xf32>
    %c0_3 = arith.constant 0 : index
    %c0_4 = arith.constant 0 : index
    %3 = vector.load %arg3[%c0_3, %c0_4] : memref<1x128xf32, #tpu.memory_space<vmem>>, vector<1x128xf32>
    %4 = vector.broadcast %3 : vector<1x128xf32> to vector<16x128xf32>
    %5 = arith.addf %2, %4 : vector<16x128xf32>
    %cst_5 = arith.constant 0.000000e+00 : f32
    %6 = vector.broadcast %cst_5 : f32 to vector<16x128xf32>
    %7 = arith.maximumf %5, %6 : vector<16x128xf32>
    %c0_6 = arith.constant 0 : index
    %c0_7 = arith.constant 0 : index
    %8 = vector.load %arg4[%c0_6, %c0_7] : memref<16x128xf32, #tpu.memory_space<vmem>>, vector<16x128xf32>
    tpu.vector_store %arg4[%c0_6, %c0_7], %7 {strides = array<i32>} : memref<16x128xf32, #tpu.memory_space<vmem>>, vector<16x128xf32>,
    return
  }
  func.func @transform_0(%arg0: i32) -> (i32, i32) {
    %c0_i32 = arith.constant 0 : i32
    %c0_i32_0 = arith.constant 0 : i32
    return %arg0, %c0_i32 : i32, i32
  }
  func.func @transform_1(%arg0: i32) -> (i32, i32) {
    %c0_i32 = arith.constant 0 : i32
    %c0_i32_0 = arith.constant 0 : i32
    %c0_i32_1 = arith.constant 0 : i32
    return %c0_i32, %c0_i32_0 : i32, i32
  }
  func.func @transform_2(%arg0: i32) -> (i32, i32) {
    %c0_i32 = arith.constant 0 : i32
    %c0_i32_0 = arith.constant 0 : i32
    %c0_i32_1 = arith.constant 0 : i32
    return %c0_i32, %c0_i32_0 : i32, i32
  }
  func.func @transform_3(%arg0: i32) -> (i32, i32) {
    %c0_i32 = arith.constant 0 : i32
    %c0_i32_0 = arith.constant 0 : i32
    return %arg0, %c0_i32 : i32, i32
  }
}

</mosaic_0001>

<bundles_post_ra>
// kernel: tpu_custom_call.1
= control target key start
LH: loop header
LB: loop body
LE: loop exit
PB: predicated region body
PF: predicated region fallthrough
CT: control target
= control target key end

     0   :  { %8 = vsyncpa [#allocation3], 0  ;;  %s276_s0 = inlined_call_operand.hbm [shape: bf16[16,32], index: 0, kind: input, shape index: {}]   ;;  %s277_s1 = inlined_call_operand.hbm [shape: bf16[32,128], index: 1, kind: input, shape index: {}]   ;;  %s278_s2 = inlined_call_operand.vmem [shape: f32[1,128], index: 2, kind: input, shape index: {}]   ;;  %s279_s3 = inlined_call_operand.hbm [shape: f32[16,128], index: 3, kind: output, shape index: {}]  }
   0x1   :  { %9 = vsyncpa [#allocation6], 0 }
   0x2   :  { %10 = vsyncpa [#allocation4], 0  ;;  %s235_s12 = smov [#allocation2]  }
   0x3   :  { %s16_s13 = sshll.u32 %s235_s12, 4  ;;  %s17_s13 = int_to_ptr.vmem [resolvable:$true] %s16_s13 }
   0x4   :  { %s177_s14 = scalar_lea.vmem %s17_s13, 128  ;;  %p182_p1 = scmp.lt.s32.totalorder %s17_s13, %s17_s13 }
   0x5   :  { %p178_p0 = scmp.ne.s32.totalorder %s17_s13, %s177_s14  ;;  %p183_p2 = scmp.lt.s32.totalorder %s177_s14, %s177_s14 }
   0x7   :  { %p184_p3 = por %p183_p2, %p182_p1 }
   0x9   :  { %p185_p4 = pnand %p184_p3, %p178_p0 }
   0xb   :  { %188 = shalt.err (!%p185_p4)
}
   0xc   :  { %s236_s15 = smov 64   ;;  %s237_s16 = smov 4  }
   0xd   :  { %22 = dma.hbm_to_vmem [thread:$0]  %s276_s0, 128, %s17_s13, [#allocation3], %s236_s15, %s236_s15, %s237_s16  }
   0xe   :  { %s238_s19 = smov [#allocation5]  }
   0xf   :  { %s28_s20 = sshll.u32 %s238_s19, 4  ;;  %s29_s20 = int_to_ptr.vmem [resolvable:$true] %s28_s20 }
  0x10   :  { %s197_s21 = scalar_lea.vmem %s29_s20, 256  ;;  %p202_p6 = scmp.lt.s32.totalorder %s29_s20, %s29_s20 }
  0x11   :  { %p198_p5 = scmp.ne.s32.totalorder %s29_s20, %s197_s21  ;;  %p203_p7 = scmp.lt.s32.totalorder %s197_s21, %s197_s21 }
  0x13   :  { %p204_p8 = por %p203_p7, %p202_p6 }
  0x15   :  { %p205_p9 = pnand %p204_p8, %p198_p5 }
  0x17   :  { %208 = shalt.err (!%p205_p9)
}
  0x18   :  { %34 = dma.hbm_to_vmem [thread:$0]  %s277_s1, 256, %s29_s20, [#allocation6], %s236_s15, %s236_s15, %s237_s16  }
  0x19   :  { %229 = dma.done.wait [#allocation3], 128  }
  0x1a   :  { %230 = vsyncadd [#allocation3], 4294967168 }
  0x1b   :  { %231 = dma.done.wait [#allocation6], 256  }
  0x1c   :  { %232 = vsyncadd [#allocation6], 4294967040  ;;  %v239_v0 = vmov 0.0   ;;  %vm240_vm0 = vmmov 0   ;;  %v166_v1 = vld [vmem:[#allocation5 + $0x8] sm:$0xff]   ;;  %v167_v2 = vld [vmem:[#allocation5] sm:$0xff]  }
  0x1d   :  { %149 = vmatprep.subr.bf16.mxu0 %v239_v0  ;;  %153 = vmatprep.mubr.msk.bf16.mxu0 %vm240_vm0, %v239_v0  ;;  %v168_v3 = vld [vmem:[#allocation2] sm:$0xff]   ;;  %vm74_vm1 = vcmask 261120   ;;  %s241_s1 = smov [#allocation7]  }
  0x1e   :  { %150 = vmatpush3.bf16.msra.mxu0 %v166_v1  ;;  %v141_v4 = vld [vmem:[%s278_s2] ss:$0 sm:$0xff]  ;;  %s128_s25 = sshll.u32 %s241_s1, 4  ;;  %s129_s25 = int_to_ptr.vmem [resolvable:$true] %s128_s25 }
  0x1f   :  { %151 = vmatprep.subr.bf16.mxu0 %v239_v0  ;;  %s209_s26 = scalar_lea.vmem %s129_s25, 256  ;;  %p214_p11 = scmp.lt.s32.totalorder %s129_s25, %s129_s25 }
  0x20   :  { %p210_p10 = scmp.ne.s32.totalorder %s129_s25, %s209_s26  ;;  %p215_p12 = scmp.lt.s32.totalorder %s209_s26, %s209_s26 }
  0x22   :  { %152 = vmatpush3.bf16.msra.mxu0 %v167_v2  ;;  %p216_p13 = por %p215_p12, %p214_p11 }
  0x24   :  { %p217_p0 = pnand %p216_p13, %p210_p10 }
  0x25   :  { %154 = vmatmul.mubr.msk.bf16.vlgmr.msra.gmra.mxu0 %vm74_vm1, %v168_v3 }
  0xe5   :  { %v112_v5 = vpop.f32.mrf.mxu0 }
  0xe6   :  { %v113_v6 = vadd.f32 %v141_v4, %v112_v5 }
  0xe7   :  { %v155_v7 = vpop.f32.mrf.mxu0 }
  0xe8   :  { %v119_v8 = vmax.f32 %v113_v6, 0.0 }
  0xe9   :  { %v115_v9 = vpop.f32.mrf.mxu0 }
  0xea   :  { %121 = vst [vmem:[#allocation7] sm:$0xff] %v119_v8  ;;  %v116_v10 = vadd.f32 %v141_v4, %v115_v9 }
  0xeb   :  { %v156_v11 = vpop.f32.mrf.mxu0 }
  0xec   :  { %v120_v12 = vmax.f32 %v116_v10, 0.0 }
  0xee   :  { %122 = vst [vmem:[#allocation7 + $0x8] sm:$0xff] %v120_v12 }
  0xef   :  { %220 = shalt.err (!%p217_p0)
}
  0xf0   :  { %s242_s2 = smov 128   ;;  %s243_s27 = smov 8  }
  0xf1   :  { %134 = dma.vmem_to_hbm [thread:$0]  %s129_s25, 256, %s279_s3, [#allocation4], %s242_s2, %s242_s2, %s243_s27  }
  0xf2   :  { %233 = dma.done.wait [#allocation4], 256  }
  0xf3   :  { %234 = vsyncadd [#allocation4], 4294967040 }
  0xf4   :  { %138 = vsyncpa [#allocation3], 1 }
  0xf5   :  { %139 = vsyncpa [#allocation6], 1 }
  0xf6   :  { %140 = vsyncpa [#allocation4], 1 }

</bundles_post_ra>
